<compile_context>
chip_gen: v7x
topology: tpu7x:2x2x1
jax: 0.10.0
libtpu: 0.0.40
codegen_flags: <defaults>
</compile_context>

<pallas_src>
import functools

import jax
import jax.numpy as jnp
from jax import lax
from jax.experimental import pallas as pl
from jax.experimental.pallas import tpu as pltpu


def bottleneck_kernel(x_ref, w1_ref, w2_ref, mask_ref, o_ref, *, W):
    # x_ref   : (Cin, HW)        one image, channels on sublanes / spatial on lanes
    # w1_ref  : (Cint, Cin)      1x1 conv weight
    # w2_ref  : (Cout, 9*Cint)   3x3 conv weight, K index = (ky*3+kx)*Cint + c
    # mask_ref: (9, 1, HW)       precomputed 0/1 boundary masks per 3x3 tap
    # o_ref   : (Cin+Cout, HW)   cat([x, conv_out], channel) for this image
    Cin = x_ref.shape[0]
    HW = x_ref.shape[1]

    x = x_ref[...]

    # Passthrough channels: store up-front so this (lane-dense) vst overlaps
    # the roll/matmul chain instead of sitting in the epilogue, and no
    # cross-sublane concat is needed before storing.
    o_ref[:Cin, :] = x.astype(o_ref.dtype)

    # conv1: 1x1 conv (bias=False) as one MXU matmul, then ReLU.
    h = jnp.dot(w1_ref[...], x, preferred_element_type=jnp.float32)   # (Cint, HW)
    h = jnp.maximum(h, 0.0)

    # TODO(synk): dropout path (droprate > 0) not implemented; module default droprate=0.0

    # conv2: 3x3 conv (padding=1, bias=False) -> im2col via XLU lane rotations
    # + precomputed boundary masks, contracted in a single K = 9*Cint matmul.
    taps = []
    t = 0
    for ky in range(3):
        for kx in range(3):
            dy, dx = ky - 1, kx - 1
            shift = (-(dy * W + dx)) % HW
            rolled = h if shift == 0 else pltpu.roll(h, shift, axis=1)
            taps.append(rolled * mask_ref[t])                          # (Cint, HW)
            t += 1
    col = jnp.concatenate(taps, axis=0)                                # (9*Cint, HW)
    out = jnp.dot(w2_ref[...], col, preferred_element_type=jnp.float32)  # (Cout, HW)

    o_ref[Cin:, :] = out.astype(o_ref.dtype)


def bottleneck_block(x_nchw, w1, w2):
    """x_nchw: (N, Cin, H, W); w1: (Cint, Cin, 1, 1); w2: (Cout, Cint, 3, 3) (OIHW)."""
    N, Cin, H, W = x_nchw.shape
    Cint = w1.shape[0]
    Cout = w2.shape[0]
    HW = H * W

    # Lane-dense kernel layout: flatten spatial into the last (lane) dim. NCHW
    # is already channel-major, so these are pure reshapes (no transposes).
    x_k = x_nchw.reshape(N, Cin, HW)
    w1_k = w1[:, :, 0, 0]                                              # (Cint, Cin)
    w2_k = jnp.transpose(w2, (0, 2, 3, 1)).reshape(Cout, 9 * Cint)     # (Cout, 9*Cint)

    # Precompute the 9 per-tap validity masks for the implicit zero padding of
    # the 3x3 conv (also covers the pltpu.roll wrap-around lanes). Built once
    # here instead of per grid step.
    pos = jnp.arange(HW, dtype=jnp.int32)
    yy = pos // W
    xx = pos % W
    masks = []
    for ky in range(3):
        for kx in range(3):
            dy, dx = ky - 1, kx - 1
            masks.append((yy + dy >= 0) & (yy + dy < H) &
                         (xx + dx >= 0) & (xx + dx < W))
    mask_k = jnp.stack(masks, axis=0).astype(x_nchw.dtype).reshape(9, 1, HW)

    out = pl.pallas_call(
        functools.partial(bottleneck_kernel, W=W),
        out_shape=jax.ShapeDtypeStruct((N, Cin + Cout, HW), x_nchw.dtype),
        grid_spec=pltpu.PrefetchScalarGridSpec(
            num_scalar_prefetch=0,
            grid=(N,),  # one image per grid step; parallel across TCs on v7x
            in_specs=[
                pl.BlockSpec((None, Cin, HW), lambda i: (i, 0, 0)),
                pl.BlockSpec((Cint, Cin), lambda i: (0, 0)),
                pl.BlockSpec((Cout, 9 * Cint), lambda i: (0, 0)),
                pl.BlockSpec((9, 1, HW), lambda i: (0, 0, 0)),
            ],
            out_specs=pl.BlockSpec((None, Cin + Cout, HW), lambda i: (i, 0, 0)),
        ),
        compiler_params=pltpu.CompilerParams(
            dimension_semantics=("parallel",)),
    )(x_k, w1_k, w2_k, mask_k)

    return out.reshape(N, Cin + Cout, H, W)


def bottleneck_ref(x, w1, w2):
    """Pure-JAX reference in NCHW (mirrors the PyTorch module with droprate=0)."""
    dn1 = lax.conv_dimension_numbers(x.shape, w1.shape, ("NCHW", "OIHW", "NCHW"))
    h = lax.conv_general_dilated(x, w1, (1, 1), "VALID", dimension_numbers=dn1)
    h = jnp.maximum(h, 0.0)
    dn2 = lax.conv_dimension_numbers(h.shape, w2.shape, ("NCHW", "OIHW", "NCHW"))
    out = lax.conv_general_dilated(h, w2, (1, 1), ((1, 1), (1, 1)),
                                   dimension_numbers=dn2)
    return jnp.concatenate([x, out], axis=1)


if __name__ == "__main__":
    # BottleneckBlock(in_planes=4, out_planes=4) -> inter_planes = 16
    N, in_planes, H, W = 2, 4, 16, 16
    out_planes = 4
    inter_planes = out_planes * 4

    key = jax.random.PRNGKey(0)
    kx, k1, k2 = jax.random.split(key, 3)

    x = jax.random.normal(kx, (N, in_planes, H, W), dtype=jnp.float32)
    # Deterministic synthetic weights (kaiming-ish scale), PyTorch OIHW layout.
    w1 = jax.random.normal(k1, (inter_planes, in_planes, 1, 1),
                           dtype=jnp.float32) * (1.0 / jnp.sqrt(in_planes))
    w2 = jax.random.normal(k2, (out_planes, inter_planes, 3, 3),
                           dtype=jnp.float32) * (1.0 / jnp.sqrt(inter_planes * 9))

    y = bottleneck_block(x, w1, w2)
    y = jax.block_until_ready(y)

    y_ref = bottleneck_ref(x, w1, w2)
    assert y.shape == (N, in_planes + out_planes, H, W), y.shape
    assert jnp.allclose(y, y_ref, atol=1e-4, rtol=1e-4), \
        float(jnp.max(jnp.abs(y - y_ref)))

    print("KERNEL_OK")
</pallas_src>

<mosaic_0001>
module attributes {stable_mosaic.version = 11 : i64} {
  func.func @bottleneck_kernel(%arg0: i32, %arg1: memref<1x4x256xf32, #tpu.memory_space<vmem>>, %arg2: memref<16x4xf32, #tpu.memory_space<vmem>>, %arg3: memref<4x144xf32, #tpu.memory_space<vmem>>, %arg4: memref<9x1x256xf32, #tpu.memory_space<vmem>>, %arg5: memref<1x8x256xf32, #tpu.memory_space<vmem>>) attributes {dimension_semantics = [#tpu.dimension_semantics<parallel>], iteration_bounds = array<i64: 2>, scalar_prefetch = 0 : i64, scratch_operands = 0 : i64, tpu.core_type = #tpu.core_type<tc>, window_params = [{transform_indices = @transform_0, window_bounds = array<i64: 1, 4, 256>}, {pipeline_mode = #tpu.pipeline_mode<synchronous>, transform_indices = @transform_1, window_bounds = array<i64: 16, 4>}, {pipeline_mode = #tpu.pipeline_mode<synchronous>, transform_indices = @transform_2, window_bounds = array<i64: 4, 144>}, {pipeline_mode = #tpu.pipeline_mode<synchronous>, transform_indices = @transform_3, window_bounds = array<i64: 9, 1, 256>}, {transform_indices = @transform_4, window_bounds = array<i64: 1, 8, 256>}]} {
    %c0 = arith.constant 0 : index
    %c0_0 = arith.constant 0 : index
    %c0_1 = arith.constant 0 : index
    %0 = vector.load %arg1[%c0, %c0_0, %c0_1] : memref<1x4x256xf32, #tpu.memory_space<vmem>>, vector<1x4x256xf32>
    %1 = vector.shape_cast %0 : vector<1x4x256xf32> to vector<4x256xf32>
    %c0_2 = arith.constant 0 : index
    %c0_3 = arith.constant 0 : index
    %c0_4 = arith.constant 0 : index
    %2 = vector.load %arg5[%c0_2, %c0_3, %c0_4] : memref<1x8x256xf32, #tpu.memory_space<vmem>>, vector<1x4x256xf32>
    %3 = vector.shape_cast %2 : vector<1x4x256xf32> to vector<4x256xf32>
    %4 = vector.shape_cast %1 : vector<4x256xf32> to vector<1x4x256xf32>
    tpu.vector_store %arg5[%c0_2, %c0_3, %c0_4], %4 {strides = array<i32>} : memref<1x8x256xf32, #tpu.memory_space<vmem>>, vector<1x4x256xf32>,
    %c0_5 = arith.constant 0 : index
    %c0_6 = arith.constant 0 : index
    %5 = vector.load %arg2[%c0_5, %c0_6] : memref<16x4xf32, #tpu.memory_space<vmem>>, vector<16x4xf32>
    %cst = arith.constant dense<0.000000e+00> : vector<16x256xf32>
    %6 = tpu.matmul %5, %1, %cst {dimension_numbers = #tpu.dot_dimension_numbers<[1], [0], [0], [1], [0, 0, 1, 1], [], []>} : vector<16x4xf32>, vector<4x256xf32>, vector<16x256xf32> -> vector<16x256xf32>
    %cst_7 = arith.constant 0.000000e+00 : f32
    %7 = vector.broadcast %cst_7 : f32 to vector<16x256xf32>
    %8 = arith.maximumf %6, %7 : vector<16x256xf32>
    %c17_i32 = arith.constant 17 : i32
    %9 = tpu.dynamic_rotate %8 by %c17_i32 dim 1 : vector<16x256xf32>, i32 -> vector<16x256xf32>
    %c0_8 = arith.constant 0 : index
    %c0_9 = arith.constant 0 : index
    %c0_10 = arith.constant 0 : index
    %10 = vector.load %arg4[%c0_8, %c0_9, %c0_10] : memref<9x1x256xf32, #tpu.memory_space<vmem>>, vector<1x1x256xf32>
    %11 = vector.shape_cast %10 : vector<1x1x256xf32> to vector<1x256xf32>
    %12 = vector.broadcast %11 : vector<1x256xf32> to vector<16x256xf32>
    %13 = arith.mulf %9, %12 : vector<16x256xf32>
    %c16_i32 = arith.constant 16 : i32
    %14 = tpu.dynamic_rotate %8 by %c16_i32 dim 1 : vector<16x256xf32>, i32 -> vector<16x256xf32>
    %c1 = arith.constant 1 : index
    %c0_11 = arith.constant 0 : index
    %c0_12 = arith.constant 0 : index
    %15 = vector.load %arg4[%c1, %c0_11, %c0_12] : memref<9x1x256xf32, #tpu.memory_space<vmem>>, vector<1x1x256xf32>
    %16 = vector.shape_cast %15 : vector<1x1x256xf32> to vector<1x256xf32>
    %17 = vector.broadcast %16 : vector<1x256xf32> to vector<16x256xf32>
    %18 = arith.mulf %14, %17 : vector<16x256xf32>
    %c15_i32 = arith.constant 15 : i32
    %19 = tpu.dynamic_rotate %8 by %c15_i32 dim 1 : vector<16x256xf32>, i32 -> vector<16x256xf32>
    %c2 = arith.constant 2 : index
    %c0_13 = arith.constant 0 : index
    %c0_14 = arith.constant 0 : index
    %20 = vector.load %arg4[%c2, %c0_13, %c0_14] : memref<9x1x256xf32, #tpu.memory_space<vmem>>, vector<1x1x256xf32>
    %21 = vector.shape_cast %20 : vector<1x1x256xf32> to vector<1x256xf32>
    %22 = vector.broadcast %21 : vector<1x256xf32> to vector<16x256xf32>
    %23 = arith.mulf %19, %22 : vector<16x256xf32>
    %c1_i32 = arith.constant 1 : i32
    %24 = tpu.dynamic_rotate %8 by %c1_i32 dim 1 : vector<16x256xf32>, i32 -> vector<16x256xf32>
    %c3 = arith.constant 3 : index
    %c0_15 = arith.constant 0 : index
    %c0_16 = arith.constant 0 : index
    %25 = vector.load %arg4[%c3, %c0_15, %c0_16] : memref<9x1x256xf32, #tpu.memory_space<vmem>>, vector<1x1x256xf32>
    %26 = vector.shape_cast %25 : vector<1x1x256xf32> to vector<1x256xf32>
    %27 = vector.broadcast %26 : vector<1x256xf32> to vector<16x256xf32>
    %28 = arith.mulf %24, %27 : vector<16x256xf32>
    %c4 = arith.constant 4 : index
    %c0_17 = arith.constant 0 : index
    %c0_18 = arith.constant 0 : index
    %29 = vector.load %arg4[%c4, %c0_17, %c0_18] : memref<9x1x256xf32, #tpu.memory_space<vmem>>, vector<1x1x256xf32>
    %30 = vector.shape_cast %29 : vector<1x1x256xf32> to vector<1x256xf32>
    %31 = vector.broadcast %30 : vector<1x256xf32> to vector<16x256xf32>
    %32 = arith.mulf %8, %31 : vector<16x256xf32>
    %c255_i32 = arith.constant 255 : i32
    %33 = tpu.dynamic_rotate %8 by %c255_i32 dim 1 : vector<16x256xf32>, i32 -> vector<16x256xf32>
    %c5 = arith.constant 5 : index
    %c0_19 = arith.constant 0 : index
    %c0_20 = arith.constant 0 : index
    %34 = vector.load %arg4[%c5, %c0_19, %c0_20] : memref<9x1x256xf32, #tpu.memory_space<vmem>>, vector<1x1x256xf32>
    %35 = vector.shape_cast %34 : vector<1x1x256xf32> to vector<1x256xf32>
    %36 = vector.broadcast %35 : vector<1x256xf32> to vector<16x256xf32>
    %37 = arith.mulf %33, %36 : vector<16x256xf32>
    %c241_i32 = arith.constant 241 : i32
    %38 = tpu.dynamic_rotate %8 by %c241_i32 dim 1 : vector<16x256xf32>, i32 -> vector<16x256xf32>
    %c6 = arith.constant 6 : index
    %c0_21 = arith.constant 0 : index
    %c0_22 = arith.constant 0 : index
    %39 = vector.load %arg4[%c6, %c0_21, %c0_22] : memref<9x1x256xf32, #tpu.memory_space<vmem>>, vector<1x1x256xf32>
    %40 = vector.shape_cast %39 : vector<1x1x256xf32> to vector<1x256xf32>
    %41 = vector.broadcast %40 : vector<1x256xf32> to vector<16x256xf32>
    %42 = arith.mulf %38, %41 : vector<16x256xf32>
    %c240_i32 = arith.constant 240 : i32
    %43 = tpu.dynamic_rotate %8 by %c240_i32 dim 1 : vector<16x256xf32>, i32 -> vector<16x256xf32>
    %c7 = arith.constant 7 : index
    %c0_23 = arith.constant 0 : index
    %c0_24 = arith.constant 0 : index
    %44 = vector.load %arg4[%c7, %c0_23, %c0_24] : memref<9x1x256xf32, #tpu.memory_space<vmem>>, vector<1x1x256xf32>
    %45 = vector.shape_cast %44 : vector<1x1x256xf32> to vector<1x256xf32>
    %46 = vector.broadcast %45 : vector<1x256xf32> to vector<16x256xf32>
    %47 = arith.mulf %43, %46 : vector<16x256xf32>
    %c239_i32 = arith.constant 239 : i32
    %48 = tpu.dynamic_rotate %8 by %c239_i32 dim 1 : vector<16x256xf32>, i32 -> vector<16x256xf32>
    %c8 = arith.constant 8 : index
    %c0_25 = arith.constant 0 : index
    %c0_26 = arith.constant 0 : index
    %49 = vector.load %arg4[%c8, %c0_25, %c0_26] : memref<9x1x256xf32, #tpu.memory_space<vmem>>, vector<1x1x256xf32>
    %50 = vector.shape_cast %49 : vector<1x1x256xf32> to vector<1x256xf32>
    %51 = vector.broadcast %50 : vector<1x256xf32> to vector<16x256xf32>
    %52 = arith.mulf %48, %51 : vector<16x256xf32>
    %53 = tpu.concatenate %13, %18, %23, %28, %32, %37, %42, %47, %52 in 0 : vector<16x256xf32>, vector<16x256xf32>, vector<16x256xf32>, vector<16x256xf32>, vector<16x256xf32>, vector<16x256xf32>, vector<16x256xf32>, vector<16x256xf32>, vector<16x256xf32> -> vector<144x256xf32>
    %c0_27 = arith.constant 0 : index
    %c0_28 = arith.constant 0 : index
    %54 = vector.load %arg3[%c0_27, %c0_28] : memref<4x144xf32, #tpu.memory_space<vmem>>, vector<4x144xf32>
    %cst_29 = arith.constant dense<0.000000e+00> : vector<4x256xf32>
    %55 = tpu.matmul %54, %53, %cst_29 {dimension_numbers = #tpu.dot_dimension_numbers<[1], [0], [0], [1], [0, 0, 1, 1], [], []>} : vector<4x144xf32>, vector<144x256xf32>, vector<4x256xf32> -> vector<4x256xf32>
    %c0_30 = arith.constant 0 : index
    %c4_31 = arith.constant 4 : index
    %c0_32 = arith.constant 0 : index
    %56 = vector.load %arg5[%c0_30, %c4_31, %c0_32] : memref<1x8x256xf32, #tpu.memory_space<vmem>>, vector<1x4x256xf32>
    %57 = vector.shape_cast %56 : vector<1x4x256xf32> to vector<4x256xf32>
    %58 = vector.shape_cast %55 : vector<4x256xf32> to vector<1x4x256xf32>
    tpu.vector_store %arg5[%c0_30, %c4_31, %c0_32], %58 {strides = array<i32>} : memref<1x8x256xf32, #tpu.memory_space<vmem>>, vector<1x4x256xf32>,
    return
  }
  func.func @transform_0(%arg0: i32) -> (i32, i32, i32) {
    %c0_i32 = arith.constant 0 : i32
    %c0_i32_0 = arith.constant 0 : i32
    %c0_i32_1 = arith.constant 0 : i32
    return %arg0, %c0_i32, %c0_i32_0 : i32, i32, i32
  }
  func.func @transform_1(%arg0: i32) -> (i32, i32) {
    %c0_i32 = arith.constant 0 : i32
    %c0_i32_0 = arith.constant 0 : i32
    %c0_i32_1 = arith.constant 0 : i32
    return %c0_i32, %c0_i32_0 : i32, i32
  }
  func.func @transform_2(%arg0: i32) -> (i32, i32) {
    %c0_i32 = arith.constant 0 : i32
    %c0_i32_0 = arith.constant 0 : i32
    %c0_i32_1 = arith.constant 0 : i32
    return %c0_i32, %c0_i32_0 : i32, i32
  }
  func.func @transform_3(%arg0: i32) -> (i32, i32, i32) {
    %c0_i32 = arith.constant 0 : i32
    %c0_i32_0 = arith.constant 0 : i32
    %c0_i32_1 = arith.constant 0 : i32
    %c0_i32_2 = arith.constant 0 : i32
    return %c0_i32, %c0_i32_0, %c0_i32_1 : i32, i32, i32
  }
  func.func @transform_4(%arg0: i32) -> (i32, i32, i32) {
    %c0_i32 = arith.constant 0 : i32
    %c0_i32_0 = arith.constant 0 : i32
    %c0_i32_1 = arith.constant 0 : i32
    return %arg0, %c0_i32, %c0_i32_0 : i32, i32, i32
  }
}

</mosaic_0001>

<bundles_post_ra>
// kernel: tpu_custom_call.1
= control target key start
LH: loop header
LB: loop body
LE: loop exit
PB: predicated region body
PF: predicated region fallthrough
CT: control target
= control target key end

     0   :  { %9 = vsyncpa [#allocation3], 0  ;;  %s1345_s0 = inlined_call_operand.hbm [shape: f32[2,4,256], index: 0, kind: input, shape index: {}]   ;;  %s1346_s1 = inlined_call_operand.vmem [shape: f32[16,4], index: 1, kind: input, shape index: {}]   ;;  %s1347_s2 = inlined_call_operand.vmem [shape: f32[4,144], index: 2, kind: input, shape index: {}]   ;;  %s1348_s3 = inlined_call_operand.vmem [shape: f32[9,1,256], index: 3, kind: input, shape index: {}]   ;;  %s1349_s4 = inlined_call_operand.hbm [shape: f32[2,8,256], index: 4, kind: output, shape index: {}]  }
   0x1   :  { %11 = vsyncpa [#allocation3 + $0x1], 0 }
   0x2   :  { %12 = vsyncpa [#allocation4], 0 }
   0x3   :  { %14 = vsyncpa [#allocation4 + $0x1], 0  ;;  %s999_s15 = smov 0   ;;  %s1001_s16 = smov 0  }
   0x4   :  { %s1003_s17 = smov 0   ;;  %s1005_s18 = smov 0  }
   0x5 LB: > { %s1020_s19 = sadd.s32 4294967295, %s961_s18   ;;  %s743_s20 = sadd.s32 4294967294, %s961_s18   ;;  %s961_s18 = sphi %s1005_s18, %s1364_s18   ;;  %s957_s17 = sphi %s1003_s17, %s1363_s17   ;;  %s953_s16 = sphi %s1001_s16, %s1362_s16   ;;  %s949_s15 = sphi %s999_s15, %s1361_s15  }
   0x6   : > { %s1024_s21 = sadd.s32 1, %s961_s18   ;;  %s27_s22 = sadd.s32 1, %s957_s17 }
   0x7   : > { %s24_s23 = ssub.s32 %s961_s18, %s1024_s21  ;;  %p34_p0 = scmp.ne.s32.totalorder %s957_s17, %s953_s16 }
   0x8   : > { %p25_p1 = scmp.eq.s32.totalorder %s24_s23, 0  ;;  %p35_p2 = scmp.eq.s32.totalorder %s961_s18, 0 }
   0x9   : > { %p40_p3 = scmp.ne.s32.totalorder %s953_s16, %s949_s15  ;;  %p41_p4 = scmp.eq.s32.totalorder %s1020_s19, 0 }
   0xa   : > { %s1036_s24 = scalar_select %p25_p1, %s957_s17, %s27_s22  }
   0xb   : > { %p1038_p5 = por %p35_p2, %p34_p0  ;;  %p1042_p6 = por %p41_p4, %p40_p3 }
   0xc   : > { %p127_p7 = scmp.eq.s32.totalorder %s1020_s19, 1  ;;  %p133_p8 = scmp.eq.s32.totalorder %s743_s20, 1 }
   0xd   : > { %p820_p10 = scmp.lt.s32.totalorder %s961_s18, 2  ;;  %s162_s29 = sand.u32 1, %s957_s17  }
   0xe   : > { %p1049_p11 = por %p127_p7, %p34_p0  ;;  %p1053_p12 = por %p133_p8, %p40_p3 }
   0xf   : > { %s770_s30 = sshll.u32 %s961_s18, 7  ;;  %s746_s5 = sshll.u32 %s162_s29, 3 }
  0x10   : > { %s1353_s27 = scalar_select %p1049_p11, 1, 0 }
  0x11   : > { %s1354_s28 = scalar_select %p1053_p12, 1, 0 }
  0x12   : > { %s1062_s8 = scalar_lea.hbm %s1345_s0, %s770_s30  ;;  %s166_s9 = scalar_lea.vmem [#allocation2], %s746_s5 }
  0x13   : > { %s174_s10 = sshll.u32 %s166_s9, 4  ;;  %p1066_p13 = pnand %p820_p10, %p1038_p5  ;;  %s1070_s10 = int_to_ptr.vmem [resolvable:$true] %s174_s10 }
  0x14   : > { %s163_s12 = scalar_lea.sflag [#allocation3], %s162_s29  ;;  %s865_s13 = scalar_lea.hbm %s1062_s8, 128 }
  0x15   : > { %p866_p2 = scmp.ne.s32.totalorder %s1062_s8, %s865_s13  ;;  %p867_p3 = pneg %p1066_p13 }
  0x16   : > { %s870_s22 = scalar_lea.hbm %s1345_s0, 256  ;;  %p871_p5 = scmp.lt.u32.totalorder %s1062_s8, %s1345_s0 }
  0x17   : > { %p868_p4 = pnand %p867_p3, %p866_p2  ;;  %p872_p8 = scmp.lt.u32.totalorder %s870_s22, %s865_s13 }
  0x18   : > { %p874_p9 = scmp.lt.u32.totalorder %s865_s13, %s1062_s8 }
  0x19   : > { %p869_p7 = pneg %p868_p4  ;;  %p873_p10 = por %p872_p8, %p871_p5 }
  0x1b   : > { %p875_p0 = por %p874_p9, %p873_p10 }
  0x1d   : > { %p876_p1 = pnand %p875_p0, %p869_p7 }
  0x1f   : > { %879 = shalt.err (!%p876_p1)
}
  0x20   : > { %s880_s29 = scalar_lea.vmem %s1070_s10, 128  ;;  %s963_s30 = smov [#allocation2]  }
  0x21   : > { %p881_p2 = scmp.ne.s32.totalorder %s1070_s10, %s880_s29  ;;  %s885_s5 = sshll.u32 %s963_s30, 4  ;;  %s886_s5 = int_to_ptr.vmem [resolvable:$false] %s885_s5 }
  0x22   : > { %s887_s6 = scalar_lea.vmem %s886_s5, 256  ;;  %p888_p11 = scmp.lt.s32.totalorder %s1070_s10, %s886_s5 }
  0x23   : > { %p883_p4 = pnand %p881_p2, %p867_p3  ;;  %p889_p5 = scmp.lt.s32.totalorder %s887_s6, %s880_s29 }
  0x25   : > { %p884_p12 = pneg %p883_p4  ;;  %p890_p8 = por %p889_p5, %p888_p11 }
  0x27   : > { %p891_p9 = pnand %p890_p8, %p884_p12 }
  0x29   : > { %894 = shalt.err (!%p891_p9)
}
  0x2a   : > { %815 = dma.hbm_to_vmem [thread:$0]  (!%p1066_p13), %s1062_s8, 128, %s1070_s10, %s163_s12  }
  0x2b   : > { %p1356_p0 = scmp.lt.s32.totalorder %s961_s18, 3  ;;  %p1357_p1 = scmp.ge.s32.totalorder %s961_s18, 1 }
  0x2d   : > { %p180_p3 = pnand %p1357_p1, %p1356_p0 }
  0x2e   : > { %s1104_s7 = sand.u32 (!%p180_p3), 1, %s953_s16  }
  0x2f   : > { %183 = sbr.rel (%p180_p3) target bundleno = 688 (0x2b0), region = 36  ;;  %s750_s9 = sshll.u32 (!%p180_p3), %s1104_s7, 3 }
  0x30   : > { %s186_s13 = scalar_lea.sflag (!%p180_p3), [#allocation3], %s1104_s7  ;;  %s189_s14 = scalar_lea.vmem (!%p180_p3), [#allocation2], %s750_s9 }
  0x36   : > { %940 = dma.done.wait (%p1042_p6), %s186_s13, 128  }
  0x37   : > { %942 = vsyncadd (%p1042_p6), %s186_s13, 4294967168  ;;  %v964_v0 = vmov 0.0   ;;  %s751_s8 = sshll.u32 %s1104_s7, 4  ;;  %v214_v1 = vld [vmem:[%s189_s14] sm:$0xff]  ;;  %vm229_vm0 = vcmask 1043456   ;;  %vm222_vm1 = vcmask 31744   ;;  %v323_v5 = vlaneseq }
  0x38   : > { %298 = vmatprep.mubr.f32.mxu0 %v964_v0  ;;  %v216_v2 = vcombine.high %v214_v1, %v214_v1  ;;  %s1113_s10 = scalar_lea.vmem [#allocation5], %s751_s8  ;;  %v220_v3 = vld [vmem:[%s1346_s1] sm:$0xff]  ;;  %v221_v4 = vld [vmem:[%s1346_s1 + $0x8] sm:$0xff]  ;;  %s965_s25 = smov 17   ;;  %vm576_vm2 = vcmask 130048  }
  0x39   : > { %218 = vst [vmem:[%s1113_s10] sm:$0xf] %v214_v1  ;;  %v333_v6 = vshrl.u32 %v323_v5, 7  ;;  %v759_v10 = vld [vmem:[%s1348_s3 + $0x8] sm:$0x3]  ;;  %s966_s29 = smov 16   ;;  %s967_s30 = smov 15  }
  0x3a   : > { %219 = vst [vmem:[%s1113_s10 + $0x8] sm:$0xf] %v216_v2  ;;  %752 = vmatprep.subr.msk.mxu0 %vm229_vm0, %v216_v2  ;;  %s968_s5 = smov 1   ;;  %s969_s6 = smov 127   ;;  %v1152_v26 = vld [vmem:[%s1347_s2] sm:$0xff]  ;;  %v1163_v39 = vand.u32 127, %v323_v5 }
  0x3b   : > { %753 = vmatpush1.msk.msra.mxu0 %vm229_vm0, %v214_v1  ;;  %v1124_v7 = vsub.s32 0, %v333_v6  ;;  %v1126_v9 = vsub.s32 1, %v333_v6  ;;  %s970_s9 = smov 113   ;;  %s971_s13 = smov 112   ;;  %v575_v27 = vcombine.high %v1152_v26, %v1152_v26  ;;  %v330_v41 = vld [vmem:[%s1348_s3] sm:$0x3] }
  0x3c   : > { %754 = vmatmul.mubr.msk.f32.vlgmr.msra.gmra.mrb[0].mxu0 %vm222_vm1, %v220_v3  ;;  %s972_s14 = smov 111   ;;  %vm325_vm3 = vcmp.lt.s32.totalorder %v1163_v39, 17  ;;  %v756_v45 = vld [vmem:[%s1348_s3 + $0x2] sm:$0x3]  ;;  %vm354_vm4 = vcmp.lt.s32.totalorder %v1163_v39, 16  ;;  %vm384_vm5 = vcmp.lt.s32.totalorder %v1163_v39, 15 }
  0x3d   : > { %304 = vmatprep.mubr.f32.mxu0 %v964_v0  ;;  %v442_v14 = vrot.slane %v759_v10, %v1124_v7  ;;  %v446_v16 = vrot.slane %v759_v10, %v1126_v9  ;;  %764 = vmatprep.mubr.msk.f32.mxu1 %vm576_vm2, %v575_v27  ;;  %v335_v44 = vrot.slane %v330_v41, %v1124_v7  ;;  %v757_v56 = vld [vmem:[%s1348_s3 + $0x4] sm:$0x3]  ;;  %v758_v10 = vld [vmem:[%s1348_s3 + $0x6] sm:$0x3]  ;;  %vm414_vm6 = vcmp.lt.s32.totalorder %v1163_v39, 1  ;;  %s771_s26 = sshll.u32 %s1020_s19, 8 }
  0x3e   : > { %v339_v46 = vrot.slane %v330_v41, %v1126_v9  ;;  %v365_v51 = vrot.slane %v756_v45, %v1124_v7  ;;  %v369_v52 = vrot.slane %v756_v45, %v1126_v9  ;;  %v395_v2 = vrot.slane %v757_v56, %v1124_v7  ;;  %s673_s20 = sshll.u32 %s1113_s10, 4  ;;  %p1358_p11 = scmp.ne.s32.totalorder %s1353_s27, 0  ;;  %s1301_s20 = int_to_ptr.vmem [resolvable:$true] %s673_s20 }
  0x3f   : > { %v399_v3 = vrot.slane %v757_v56, %v1126_v9  ;;  %v429_v27 = vrot.slane %v758_v10, %v1126_v9  ;;  %vm461_vm7 = vcmp.lt.s32.totalorder %v1163_v39, 127  ;;  %vm491_vm8 = vcmp.lt.s32.totalorder %v1163_v39, 113  ;;  %s973_s19 = smov [#allocation5]  }
  0x40   : > { %755 = vmatmul.mubr.msk.f32.gmra.mrb[2].mxu0 %vm222_vm1, %v221_v4  ;;  %vm521_vm9 = vcmp.lt.s32.totalorder %v1163_v39, 112  ;;  %vm551_vm10 = vcmp.lt.s32.totalorder %v1163_v39, 111 }
 0x10f   : > { %v300_v8 = vpop.f32.mrb[0].mxu0 }
 0x110   : > { %v311_v11 = vmax.f32 %v300_v8, 0.0  ;;  %v302_v12 = vpop.f32.mrb[1].mxu0 }
 0x111   : > { %v312_v13 = vmax.f32 %v302_v12, 0.0 }
 0x112   : > { %315 = vrot.lane.b32.xlu0 %v311_v11, %s965_s25  ;;  %v1135_v20 = vmul.f32 %v442_v14, %v311_v11 }
 0x113   : > { %319 = vrot.lane.b32.xlu1 %v312_v13, %s965_s25  ;;  %v306_v15 = vpop.f32.mrb[2].mxu0  ;;  %v1139_v22 = vmul.f32 %v446_v16, %v312_v13 }
 0x114   : > { %v313_v17 = vmax.f32 %v306_v15, 0.0  ;;  %v308_v18 = vpop.f32.mrb[3].mxu0 }
 0x115   : > { %v314_v19 = vmax.f32 %v308_v18, 0.0 }
 0x116   : > { %346 = vrot.lane.b32.xlu0 %v311_v11, %s966_s29  ;;  %v1137_v21 = vmul.f32 %v442_v14, %v313_v17 }
 0x117   : > { %348 = vrot.lane.b32.xlu1 %v313_v17, %s966_s29  ;;  %v1141_v23 = vmul.f32 %v446_v16, %v314_v19 }
 0x118   : > { %v790_v24 = vpack.c.bf16 %v1137_v21, %v1135_v20 }
 0x119   : > { %v788_v25 = vpack.c.bf16 %v1141_v23, %v1139_v22  ;;  %v762_v22 = vld [vmem:[%s1348_s3 + $0xe] sm:$0x3] }
 0x11a   : > { %376 = vrot.lane.b32.xlu0 %v311_v11, %s967_s30 }
 0x11b   : > { %378 = vrot.lane.b32.xlu1 %v313_v17, %s967_s30 }
 0x11e   : > { %406 = vrot.lane.b32.xlu0 %v311_v11, %s968_s5 }
 0x11f   : > { %408 = vrot.lane.b32.xlu1 %v313_v17, %s968_s5 }
 0x122   : > { %350 = vrot.lane.b32.xlu0 %v312_v13, %s966_s29 }
 0x123   : > { %455 = vrot.lane.b32.xlu1 %v313_v17, %s969_s6 }
 0x126   : > { %380 = vrot.lane.b32.xlu0 %v312_v13, %s967_s30 }
 0x127   : > { %485 = vrot.lane.b32.xlu1 %v313_v17, %s970_s9 }
 0x12a   : > { %410 = vrot.lane.b32.xlu0 %v312_v13, %s968_s5 }
 0x12b   : > { %515 = vrot.lane.b32.xlu1 %v313_v17, %s971_s13 }
 0x12e   : > { %317 = vrot.lane.b32.xlu0 %v313_v17, %s965_s25 }
 0x12f   : > { %321 = vrot.lane.b32.xlu1 %v314_v19, %s965_s25  ;;  %s1299_s25 = scalar_lea.hbm %s1349_s4, %s771_s26 }
 0x132   : > { %453 = vrot.lane.b32.xlu0 %v311_v11, %s969_s6 }
 0x133   : > { %352 = vrot.lane.b32.xlu1 %v314_v19, %s966_s29  ;;  %s659_s29 = scalar_lea.sflag [#allocation4], %s1104_s7 }
 0x136   : > { %457 = vrot.lane.b32.xlu0 %v312_v13, %s969_s6 }
 0x137   : > { %382 = vrot.lane.b32.xlu1 %v314_v19, %s967_s30  ;;  %s895_s30 = scalar_lea.vmem %s1301_s20, 256 }
 0x138   : > { %p896_p6 = scmp.ne.s32.totalorder %s1301_s20, %s895_s30 }
 0x13a   : > { %483 = vrot.lane.b32.xlu0 %v311_v11, %s970_s9  ;;  %p897_p12 = pnand %p896_p6, %p1358_p11 }
 0x13b   : > { %412 = vrot.lane.b32.xlu1 %v314_v19, %s968_s5  ;;  %s899_s5 = sshll.u32 %s973_s19, 4  ;;  %s900_s5 = int_to_ptr.vmem [resolvable:$false] %s899_s5 }
 0x13c   : > { %p898_p13 = pneg %p897_p12  ;;  %p902_p7 = scmp.lt.s32.totalorder %s1301_s20, %s900_s5 }
 0x13e   : > { %487 = vrot.lane.b32.xlu0 %v312_v13, %s970_s9 }
 0x13f   : > { %545 = vrot.lane.b32.xlu1 %v313_v17, %s972_s14 }
 0x142   : > { %513 = vrot.lane.b32.xlu0 %v311_v11, %s971_s13 }
 0x143   : > { %459 = vrot.lane.b32.xlu1 %v314_v19, %s969_s6  ;;  %s901_s6 = scalar_lea.vmem %s900_s5, 512 }
 0x144   : > { %p903_p10 = scmp.lt.s32.totalorder %s901_s6, %s895_s30 }
 0x146   : > { %517 = vrot.lane.b32.xlu0 %v312_v13, %s971_s13  ;;  %p904_p2 = por %p903_p10, %p902_p7 }
 0x147   : > { %489 = vrot.lane.b32.xlu1 %v314_v19, %s970_s9 }
 0x148   : > { %p905_p4 = pnand %p904_p2, %p898_p13 }
 0x14a   : > { %543 = vrot.lane.b32.xlu0 %v311_v11, %s972_s14 }
 0x14b   : > { %519 = vrot.lane.b32.xlu1 %v314_v19, %s971_s13 }
 0x14e   : > { %547 = vrot.lane.b32.xlu0 %v312_v13, %s972_s14 }
 0x14f   : > { %549 = vrot.lane.b32.xlu1 %v314_v19, %s972_s14  ;;  %v425_v19 = vrot.slane %v758_v10, %v1124_v7 }
 0x184   : > { %v316_v28 = vpop.permute.xlu0 %315 }
 0x185   : > { %v320_v29 = vpop.permute.xlu1 %319 }
 0x186   : > { %v326_v47 = vsel %vm325_vm3, %v316_v28, %v320_v29  ;;  %v328_v48 = vsel %vm325_vm3, %v320_v29, %v316_v28 }
 0x187   : > { %v342_v55 = vmul.f32 %v335_v44, %v328_v48  ;;  %v343_v58 = vmul.f32 %v339_v46, %v326_v47 }
 0x188   : > { %v347_v30 = vpop.permute.xlu0 %346 }
 0x189   : > { %v349_v31 = vpop.permute.xlu1 %348 }
 0x18c   : > { %v377_v32 = vpop.permute.xlu0 %376 }
 0x18d   : > { %v379_v33 = vpop.permute.xlu1 %378 }
 0x190   : > { %v1156_v34 = vpop.permute.xlu0 %406 }
 0x191   : > { %v1158_v35 = vpop.permute.xlu1 %408 }
 0x194   : > { %v351_v36 = vpop.permute.xlu0 %350 }
 0x195   : > { %v1160_v37 = vpop.permute.xlu1 %455  ;;  %v355_v60 = vsel %vm354_vm4, %v347_v30, %v351_v36  ;;  %v357_v61 = vsel %vm354_vm4, %v351_v36, %v347_v30 }
 0x196   : > { %v372_v6 = vmul.f32 %v365_v51, %v357_v61  ;;  %v373_v8 = vmul.f32 %v369_v52, %v355_v60 }
 0x198   : > { %v381_v38 = vpop.permute.xlu0 %380 }
 0x199   : > { %v1165_v40 = vpop.permute.xlu1 %485  ;;  %v385_v13 = vsel %vm384_vm5, %v377_v32, %v381_v38  ;;  %v387_v14 = vsel %vm384_vm5, %v381_v38, %v377_v32 }
 0x19a   : > { %v402_v30 = vmul.f32 %v395_v2, %v387_v14 }
 0x19c   : > { %v411_v42 = vpop.permute.xlu0 %410 }
 0x19d   : > { %v1171_v43 = vpop.permute.xlu1 %515  ;;  %v415_v38 = vsel %vm414_vm6, %v1156_v34, %v411_v42  ;;  %v417_v41 = vsel %vm414_vm6, %v411_v42, %v1156_v34  ;;  %v760_v34 = vld [vmem:[%s1348_s3 + $0xa] sm:$0x3] }
 0x19e   : > { %v472_v56 = vrot.slane %v760_v34, %v1124_v7 }
 0x1a0   : > { %v318_v49 = vpop.permute.xlu0 %317 }
 0x1a1   : > { %v322_v50 = vpop.permute.xlu1 %321 }
 0x1a2   : > { %v327_v53 = vsel %vm325_vm3, %v318_v49, %v322_v50  ;;  %v329_v54 = vsel %vm325_vm3, %v322_v50, %v318_v49  ;;  %v432_v49 = vmul.f32 %v425_v19, %v417_v41  ;;  %v433_v50 = vmul.f32 %v429_v27, %v415_v38 }
 0x1a3   : > { %v344_v57 = vmul.f32 %v335_v44, %v329_v54  ;;  %v345_v59 = vmul.f32 %v339_v46, %v327_v53 }
 0x1a4   : > { %v454_v62 = vpop.permute.xlu0 %453 }
 0x1a5   : > { %v353_v63 = vpop.permute.xlu1 %352  ;;  %v772_v0 = vpack.c.bf16 %v345_v59, %v343_v58  ;;  %v774_v1 = vpack.c.bf16 %v344_v57, %v342_v55  ;;  %v761_v57 = vld [vmem:[%s1348_s3 + $0xc] sm:$0x3] }
 0x1a6   : > { %v356_v4 = vsel %vm354_vm4, %v349_v31, %v353_v63  ;;  %v358_v5 = vsel %vm354_vm4, %v353_v63, %v349_v31  ;;  %v403_v31 = vmul.f32 %v399_v3, %v385_v13  ;;  %v502_v63 = vrot.slane %v761_v57, %v1124_v7 }
 0x1a7   : > { %v374_v11 = vmul.f32 %v365_v51, %v358_v5  ;;  %v375_v12 = vmul.f32 %v369_v52, %v356_v4  ;;  %773 = vmatprep.subr.bf16.mxu1 %v772_v0  ;;  %v506_v0 = vrot.slane %v761_v57, %v1126_v9 }
 0x1a8   : > { %v458_v15 = vpop.permute.xlu0 %457  ;;  %775 = vmatpush1.bf16.msra.mxu1 %v774_v1 }
 0x1a9   : > { %v383_v16 = vpop.permute.xlu1 %382  ;;  %v776_v17 = vpack.c.bf16 %v375_v12, %v373_v8  ;;  %v778_v18 = vpack.c.bf16 %v374_v11, %v372_v6  ;;  %v462_v58 = vsel %vm461_vm7, %v454_v62, %v458_v15  ;;  %v464_v59 = vsel %vm461_vm7, %v458_v15, %v454_v62 }
 0x1aa   : > { %v386_v28 = vsel %vm384_vm5, %v379_v33, %v383_v16  ;;  %v388_v29 = vsel %vm384_vm5, %v383_v16, %v379_v33  ;;  %v532_v11 = vrot.slane %v762_v22, %v1124_v7  ;;  %v536_v12 = vrot.slane %v762_v22, %v1126_v9  ;;  %v763_v16 = vld [vmem:[%s1348_s3 + $0x10] sm:$0x3] }
 0x1ab   : > { %v404_v32 = vmul.f32 %v395_v2, %v388_v29  ;;  %v405_v36 = vmul.f32 %v399_v3, %v386_v28  ;;  %777 = vmatprep.subr.bf16.mxu1 %v776_v17  ;;  %v479_v2 = vmul.f32 %v472_v56, %v462_v58 }
 0x1ac   : > { %v484_v44 = vpop.permute.xlu0 %483  ;;  %779 = vmatpush1.bf16.msra.mxu1 %v778_v18 }
 0x1ad   : > { %v413_v45 = vpop.permute.xlu1 %412  ;;  %v780_v46 = vpack.c.bf16 %v405_v36, %v403_v31  ;;  %v782_v47 = vpack.c.bf16 %v404_v32, %v402_v30  ;;  %v562_v31 = vrot.slane %v763_v16, %v1124_v7  ;;  %v566_v32 = vrot.slane %v763_v16, %v1126_v9 }
 0x1ae   : > { %v416_v33 = vsel %vm414_vm6, %v1158_v35, %v413_v45  ;;  %v418_v48 = vsel %vm414_vm6, %v413_v45, %v1158_v35  ;;  %v476_v35 = vrot.slane %v760_v34, %v1126_v9 }
 0x1af   : > { %v434_v51 = vmul.f32 %v425_v19, %v418_v48  ;;  %v435_v52 = vmul.f32 %v429_v27, %v416_v33  ;;  %781 = vmatprep.subr.bf16.mxu1 %v780_v46 }
 0x1b0   : > { %v488_v42 = vpop.permute.xlu0 %487  ;;  %783 = vmatpush1.bf16.msra.mxu1 %v782_v47  ;;  %v480_v3 = vmul.f32 %v476_v35, %v464_v59 }
 0x1b1   : > { %v1225_v53 = vpop.permute.xlu1 %545  ;;  %v784_v54 = vpack.c.bf16 %v435_v52, %v433_v50  ;;  %v786_v55 = vpack.c.bf16 %v434_v51, %v432_v49  ;;  %v492_v23 = vsel %vm491_vm8, %v484_v44, %v488_v42 }
 0x1b2   : > { %v509_v15 = vmul.f32 %v502_v63, %v492_v23 }
 0x1b3   : > { %785 = vmatprep.subr.bf16.mxu1 %v784_v54 }
 0x1b4   : > { %v514_v60 = vpop.permute.xlu0 %513  ;;  %787 = vmatpush1.bf16.msra.mxu1 %v786_v55 }
 0x1b5   : > { %v460_v61 = vpop.permute.xlu1 %459  ;;  %789 = vmatprep.subr.bf16.mxu1 %v788_v25  ;;  %v494_v25 = vsel %vm491_vm8, %v488_v42, %v484_v44 }
 0x1b6   : > { %v463_v1 = vsel %vm461_vm7, %v1160_v37, %v460_v61  ;;  %v465_v62 = vsel %vm461_vm7, %v460_v61, %v1160_v37  ;;  %v510_v20 = vmul.f32 %v506_v0, %v494_v25 }
 0x1b7   : > { %v481_v4 = vmul.f32 %v472_v56, %v463_v1  ;;  %v482_v5 = vmul.f32 %v476_v35, %v465_v62 }
 0x1b8   : > { %v518_v6 = vpop.permute.xlu0 %517  ;;  %791 = vmatpush1.bf16.msra.mxu1 %v790_v24 }
 0x1b9   : > { %v490_v37 = vpop.permute.xlu1 %489  ;;  %v792_v8 = vpack.c.bf16 %v482_v5, %v480_v3  ;;  %v794_v10 = vpack.c.bf16 %v481_v4, %v479_v2  ;;  %v522_v17 = vsel %vm521_vm9, %v514_v60, %v518_v6  ;;  %v524_v18 = vsel %vm521_vm9, %v518_v6, %v514_v60 }
 0x1ba   : > { %v493_v13 = vsel %vm491_vm8, %v1165_v40, %v490_v37  ;;  %v495_v14 = vsel %vm491_vm8, %v490_v37, %v1165_v40  ;;  %v539_v36 = vmul.f32 %v532_v11, %v522_v17  ;;  %v540_v38 = vmul.f32 %v536_v12, %v524_v18 }
 0x1bb   : > { %v511_v21 = vmul.f32 %v502_v63, %v493_v13  ;;  %v512_v24 = vmul.f32 %v506_v0, %v495_v14  ;;  %793 = vmatprep.subr.bf16.mxu1 %v792_v8 }
 0x1bc   : > { %v544_v19 = vpop.permute.xlu0 %543  ;;  %795 = vmatpush1.bf16.msra.mxu1 %v794_v10 }
 0x1bd   : > { %v520_v27 = vpop.permute.xlu1 %519  ;;  %v796_v28 = vpack.c.bf16 %v512_v24, %v510_v20  ;;  %v798_v40 = vpack.c.bf16 %v511_v21, %v509_v15 }
 0x1be   : > { %v523_v29 = vsel %vm521_vm9, %v1171_v43, %v520_v27  ;;  %v525_v30 = vsel %vm521_vm9, %v520_v27, %v1171_v43 }
 0x1bf   : > { %v541_v41 = vmul.f32 %v532_v11, %v523_v29  ;;  %v542_v44 = vmul.f32 %v536_v12, %v525_v30  ;;  %797 = vmatprep.subr.bf16.mxu1 %v796_v28 }
 0x1c0   : > { %v548_v45 = vpop.permute.xlu0 %547  ;;  %799 = vmatpush1.bf16.msra.mxu1 %v798_v40 }
 0x1c1   : > { %v552_v46 = vsel %vm551_vm10, %v544_v19, %v548_v45  ;;  %v554_v47 = vsel %vm551_vm10, %v548_v45, %v544_v19  ;;  %v550_v33 = vpop.permute.xlu1 %549  ;;  %v800_v43 = vpack.c.bf16 %v542_v44, %v540_v38  ;;  %v802_v7 = vpack.c.bf16 %v541_v41, %v539_v36 }
 0x1c2   : > { %v569_v48 = vmul.f32 %v562_v31, %v552_v46  ;;  %v570_v9 = vmul.f32 %v566_v32, %v554_v47  ;;  %v553_v49 = vsel %vm551_vm10, %v1225_v53, %v550_v33  ;;  %v555_v50 = vsel %vm551_vm10, %v550_v33, %v1225_v53 }
 0x1c3   : > { %v571_v51 = vmul.f32 %v562_v31, %v553_v49  ;;  %v572_v52 = vmul.f32 %v566_v32, %v555_v50  ;;  %801 = vmatprep.subr.bf16.mxu1 %v800_v43 }
 0x1c4   : > { %803 = vmatpush1.bf16.msra.mxu1 %v802_v7 }
 0x1c5   : > { %v804_v34 = vpack.c.bf16 %v572_v52, %v570_v9  ;;  %v806_v42 = vpack.c.bf16 %v571_v51, %v569_v48 }
 0x1c7   : > { %805 = vmatprep.subr.bf16.mxu1 %v804_v34 }
 0x1c8   : > { %807 = vmatpush1.bf16.msra.mxu1 %v806_v42 }
 0x1cb   : > { %644 = vmatmul.mubr.f32.vlgmr.msra.gmra.mrb[0].mxu1 %v1152_v26 }
 0x29e   : > { %v645_v54 = vpop.f32.mrb[0].mxu1 }
 0x29f   : > { %v652_v55 = vrot.slane %v645_v54, 4  ;;  %v647_v39 = vpop.f32.mrb[1].mxu1 }
 0x2a0   : > { %v653_v53 = vrot.slane %v647_v39, 4 }
 0x2a1   : > { %656 = vst [vmem:[%s1113_s10] sm:$0xf0] %v652_v55 }
 0x2a2   : > { %657 = vst [vmem:[%s1113_s10 + $0x8] sm:$0xf0] %v653_v53 }
 0x2a3   : > { %908 = shalt.err (!%p905_p4)
}
 0x2a4   : > { %s909_s7 = scalar_lea.hbm %s1299_s25, 256  ;;  %s913_s13 = scalar_lea.hbm %s1349_s4, 512 }
 0x2a5   : > { %p910_p5 = scmp.ne.s32.totalorder %s1299_s25, %s909_s7  ;;  %p914_p0 = scmp.lt.u32.totalorder %s1299_s25, %s1349_s4 }
 0x2a6   : > { %p915_p1 = scmp.lt.u32.totalorder %s913_s13, %s909_s7  ;;  %p917_p6 = scmp.lt.u32.totalorder %s909_s7, %s1299_s25 }
 0x2a7   : > { %p911_p8 = pnand %p910_p5, %p1358_p11 }
 0x2a8   : > { %p916_p3 = por %p915_p1, %p914_p0 }
 0x2a9   : > { %p912_p9 = pneg %p911_p8 }
 0x2aa   : > { %p918_p12 = por %p917_p6, %p916_p3 }
 0x2ac   : > { %p919_p13 = pnand %p918_p12, %p912_p9 }
 0x2ae   : > { %922 = shalt.err (!%p919_p13)
}
 0x2af   : > { %810 = dma.vmem_to_hbm [thread:$0]  (%p1358_p11), %s1301_s20, 256, %s1299_s25, %s659_s29  }
 0x2b0 PF: > { %s685_s11 = sand.u32 1, %s949_s15   ;;  %p1359_p7 = scmp.ne.s32.totalorder %s1354_s28, 0 }
 0x2b1   : > { %p1360_p10 = scmp.ge.s32.totalorder %s961_s18, 2  ;;  %s686_s12 = scalar_lea.sflag [#allocation4], %s685_s11 }
 0x2b3   : > { %p817_p2 = pnand %p1360_p10, %p1359_p7 }
 0x2b5   : > { %944 = dma.done.wait (!%p817_p2), %s686_s12, 256  }
 0x2b6   : > { %946 = vsyncadd (!%p817_p2), %s686_s12, 4294967040  ;;  %p17_p4 = scmp.ge.s32.totalorder %s1024_s21, 4   ;;  %s1361_s15 = smov %s953_s16 }
 0x2b7   : > { %s1362_s16 = smov %s957_s17  ;;  %s1363_s17 = smov %s1036_s24 }
 0x2b8   : > { %s1364_s18 = smov %s1024_s21  ;;  %19 = sbr.rel (!%p17_p4) target bundleno = 5 (0x5), region = 89 }
 0x2bf   :  { %691 = vsyncpa [#allocation3], 1 }
 0x2c0   :  { %693 = vsyncpa [#allocation3 + $0x1], 1 }
 0x2c1   :  { %694 = vsyncpa [#allocation4], 1 }
 0x2c2   :  { %696 = vsyncpa [#allocation4 + $0x1], 1 }

</bundles_post_ra>
